<compile_context>
chip_gen: v7x
topology: tpu7x:2x2x1
jax: 0.10.0
libtpu: 0.0.40
codegen_flags: <defaults>
</compile_context>

<pallas_src>
import re

import jax
import jax.numpy as jnp
from jax.experimental import pallas as pl
from jax.experimental.pallas import tpu as pltpu


def _round_up(a, b):
    return ((a + b - 1) // b) * b


def _cdiv(a, b):
    return (a + b - 1) // b


def _tpu_gen_and_vmem():
    """Best-effort TPU generation + physical per-core VMEM capacity (bytes)."""
    gen = 0
    try:
        kind = jax.devices()[0].device_kind
    except Exception:
        kind = ""
    m = re.search(r"(\d+)", kind)
    if m:
        gen = int(m.group(1))
    vmem = None
    try:
        vmem = int(pltpu.get_tpu_info().vmem_capacity_bytes)
    except Exception:
        vmem = None
    if vmem is None:
        # v7x has 64 MiB per TC; v4/v5/v6 have 128 MiB; unknown -> conservative.
        vmem = (64 << 20) if (gen >= 7 or gen == 0) else (128 << 20)
    return gen, vmem


def _mlp_kernel(x_ref, wgu_ref, bgu_ref, wd_ref, bd_ref, o_ref, acc_ref):
    """One (tm rows) x (ti intermediate columns) step of the fused SwiGLU MLP."""
    k = pl.program_id(1)
    nk = pl.num_programs(1)
    ti = wd_ref.shape[0]

    # Fold the down-proj bias into the f32 accumulator once per row tile.
    @pl.when(k == 0)
    def _init():
        acc_ref[...] = jnp.broadcast_to(bd_ref[...], acc_ref.shape)

    x = x_ref[...]
    # Fused gate|up projection: one weight DMA stream, one MXU pass, f32 accum.
    gu = jnp.dot(x, wgu_ref[...], preferred_element_type=jnp.float32)
    gu = gu + bgu_ref[...]                       # f32 bias add (broadcast over rows)
    gate = gu[:, :ti]
    up = gu[:, ti:]
    # SiLU in f32 (EUP sigmoid), then gate * up.
    h = (gate * jax.nn.sigmoid(gate)) * up
    # Partial down projection for this I-slice (f32 accumulation on the MXU).
    partial = jnp.dot(h.astype(wd_ref.dtype), wd_ref[...],
                      preferred_element_type=jnp.float32)

    @pl.when(k < nk - 1)
    def _accumulate():
        acc_ref[...] += partial

    # Last I-slice: write the finished row tile directly (no extra acc RMW).
    @pl.when(k == nk - 1)
    def _finalize():
        o_ref[...] = (acc_ref[...] + partial).astype(o_ref.dtype)


def prepare_mlp_weights(gate_w, gate_b, up_w, up_b, down_w, down_b, *,
                        ti=None, compute_dtype=jnp.bfloat16):
    """One-time weight prep (hoisted out of the per-token hot path).

    PyTorch nn.Linear layout in: gate_w/up_w (I, H), down_w (H, I), biases (out,).
    Casts weights to compute_dtype (default bf16: MXU-native on all current TPUs),
    transposes to (in, out) layout, zero-pads H and I to lane-dense multiples,
    and interleaves gate/up per I-slice so the kernel does ONE fused (Hp, 2*ti)
    matmul per grid step.
    """
    I, H = gate_w.shape
    cdtype = jnp.dtype(compute_dtype)

    gen, _ = _tpu_gen_and_vmem()
    if ti is None:
        # Generation-aware intermediate-slice width (VMEM capacity / ridge point).
        ti = 256 if gen >= 7 else (1024 if gen == 5 else 512)

    Hp = _round_up(H, 128)
    ti = min(_round_up(ti, 128), _round_up(I, 128))
    Ip = _round_up(I, ti)
    nk = Ip // ti

    wg_t = jnp.pad(gate_w.T.astype(cdtype), ((0, Hp - H), (0, Ip - I)))  # (Hp, Ip)
    wu_t = jnp.pad(up_w.T.astype(cdtype), ((0, Hp - H), (0, Ip - I)))    # (Hp, Ip)
    wd_t = jnp.pad(down_w.T.astype(cdtype), ((0, Ip - I), (0, Hp - H)))  # (Ip, Hp)
    bg = jnp.pad(gate_b.astype(jnp.float32), (0, Ip - I))
    bu = jnp.pad(up_b.astype(jnp.float32), (0, Ip - I))
    bd = jnp.pad(down_b.astype(jnp.float32), (0, Hp - H)).reshape(1, Hp)

    # Interleave gate/up per I-slice: fused block k covers columns
    # [2*ti*k, 2*ti*(k+1)) = [ gate slice k | up slice k ].
    wgu = jnp.stack([wg_t.reshape(Hp, nk, ti), wu_t.reshape(Hp, nk, ti)],
                    axis=2).reshape(Hp, 2 * Ip)
    bgu = jnp.stack([bg.reshape(nk, ti), bu.reshape(nk, ti)],
                    axis=1).reshape(1, 2 * Ip)

    # TODO(synk): for decode / small-M (weight-bandwidth-bound) add a streamed
    # int8 (v5e/v6e) / fp8 (v7x) weight path with per-channel scales in-kernel.

    return dict(wgu=wgu, bgu=bgu, wd=wd_t, bd=bd,
                H=H, I=I, Hp=Hp, Ip=Ip, ti=ti, cdtype=cdtype)


def _vmem_bytes(tm, ti, Hp, cbpe, obpe):
    """VMEM estimate: double-buffered blocks + scratch + in-kernel temporaries."""
    two_ti = 2 * ti
    b = 2 * tm * Hp * cbpe           # x row tile
    b += 2 * Hp * two_ti * cbpe      # fused gate|up weight slice
    b += 2 * ti * Hp * cbpe          # down weight slice
    b += 2 * tm * Hp * obpe          # output tile
    b += tm * Hp * 4                 # f32 accumulator scratch
    b += 2 * 8 * two_ti * 4          # fused gate|up bias block (sublane-8 padded)
    b += 2 * 8 * Hp * 4              # down-proj bias block (sublane-8 padded)
    # In-kernel temporaries:
    b += tm * two_ti * 4             # gu (f32)
    b += tm * ti * 4                 # h (f32)
    b += tm * ti * cbpe              # h cast back to compute dtype
    b += tm * Hp * 4                 # partial down product (f32)
    return b


def mlp_pallas(x, params, *, tm=None):
    """x: (B, S, H). params: output of prepare_mlp_weights()."""
    B, S, H = x.shape
    assert H == params["H"], "hidden size mismatch"
    Hp, Ip, ti = params["Hp"], params["Ip"], params["ti"]
    cdtype = params["cdtype"]
    out_dtype = x.dtype
    cbpe = jnp.dtype(cdtype).itemsize
    obpe = jnp.dtype(out_dtype).itemsize

    gen, vmem_cap = _tpu_gen_and_vmem()
    vmem_budget = int(vmem_cap * 0.85)     # headroom: never request all of VMEM

    # Sub-32-bit compute dtypes need taller sublane-minimum row tiles.
    sub = {4: 8, 2: 16, 1: 32}.get(cbpe, 8)

    M = B * S
    if tm is None:
        # Generation-aware row tile: above the HBM/MXU ridge for bf16 weights.
        tm = 512 if gen >= 7 else (640 if gen == 6 else (384 if gen == 5 else 256))
    tm = min(_round_up(tm, sub), _round_up(M, sub))

    # Megacore: keep >= 2 row tiles when M allows it so both TensorCores get work.
    if _cdiv(M, tm) < 2:
        half = _round_up(max(_cdiv(M, 2), sub), sub)
        if half < tm:
            tm = half

    # Shrink the row tile until the kernel fits the generation's VMEM budget.
    while tm > sub and _vmem_bytes(tm, ti, Hp, cbpe, obpe) > vmem_budget:
        tm = max(sub, _round_up(tm // 2, sub))

    Mp = _round_up(M, tm)                  # cdiv-style tiling via zero-pad
    grid = (Mp // tm, Ip // ti)
    two_ti = 2 * ti

    need = _vmem_bytes(tm, ti, Hp, cbpe, obpe)
    vmem_limit = int(min(max(int(need * 1.15) + (2 << 20), 32 << 20), vmem_budget))

    x2 = x.reshape(M, H).astype(cdtype)
    x2 = jnp.pad(x2, ((0, Mp - M), (0, Hp - H)))

    out2 = pl.pallas_call(
        _mlp_kernel,
        out_shape=jax.ShapeDtypeStruct((Mp, Hp), out_dtype),
        grid_spec=pltpu.PrefetchScalarGridSpec(
            num_scalar_prefetch=0,
            grid=grid,
            in_specs=[
                pl.BlockSpec((tm, Hp), lambda i, k: (i, 0)),       # x rows (revisited over k)
                pl.BlockSpec((Hp, two_ti), lambda i, k: (0, k)),   # fused gate|up weight slice
                pl.BlockSpec((1, two_ti), lambda i, k: (0, k)),    # fused gate|up bias slice
                pl.BlockSpec((ti, Hp), lambda i, k: (k, 0)),       # down weight I-slice
                pl.BlockSpec((1, Hp), lambda i, k: (0, 0)),        # down bias (resident)
            ],
            out_specs=pl.BlockSpec((tm, Hp), lambda i, k: (i, 0)),
            scratch_shapes=[pltpu.VMEM((tm, Hp), jnp.float32)],
        ),
        compiler_params=pltpu.CompilerParams(
            dimension_semantics=("parallel", "arbitrary"),
            vmem_limit_bytes=vmem_limit,
        ),
    )(x2, params["wgu"], params["bgu"], params["wd"], params["bd"])

    return out2[:M, :H].reshape(B, S, H)


def mlp_reference(x, gate_w, gate_b, up_w, up_b, down_w, down_b,
                  compute_dtype=None):
    """Pure-JAX reference mirroring the kernel's quantization points."""
    hi = jax.lax.Precision.HIGHEST
    f32 = jnp.float32
    if compute_dtype is not None and jnp.dtype(compute_dtype) != f32:
        q = lambda a: a.astype(compute_dtype).astype(f32)
    else:
        q = lambda a: a.astype(f32)
    xq = q(x)
    gate = jnp.einsum("bsh,ih->bsi", xq, q(gate_w), precision=hi) + gate_b.astype(f32)
    up = jnp.einsum("bsh,ih->bsi", xq, q(up_w), precision=hi) + up_b.astype(f32)
    h = q(jax.nn.silu(gate) * up)
    return jnp.einsum("bsi,hi->bsh", h, q(down_w), precision=hi) + down_b.astype(f32)


def _make_params(key, hidden, intermediate, dtype=jnp.float32):
    ks = jax.random.split(key, 6)
    sh = 1.0 / jnp.sqrt(hidden)
    si = 1.0 / jnp.sqrt(intermediate)
    gate_w = jax.random.uniform(ks[0], (intermediate, hidden), dtype, -sh, sh)
    gate_b = jax.random.uniform(ks[1], (intermediate,), dtype, -sh, sh)
    up_w = jax.random.uniform(ks[2], (intermediate, hidden), dtype, -sh, sh)
    up_b = jax.random.uniform(ks[3], (intermediate,), dtype, -sh, sh)
    down_w = jax.random.uniform(ks[4], (hidden, intermediate), dtype, -si, si)
    down_b = jax.random.uniform(ks[5], (hidden,), dtype, -si, si)
    return gate_w, gate_b, up_w, up_b, down_w, down_b


if __name__ == "__main__":
    key = jax.random.PRNGKey(0)

    # --- Test 1: tiny module shapes, explicit f32 compute path. ---
    batch, seq, hidden, intermediate = 2, 8, 32, 64
    kx, kw = jax.random.split(key)
    x = jax.random.normal(kx, (batch, seq, hidden), dtype=jnp.float32)
    w = _make_params(kw, hidden, intermediate)

    params_f32 = prepare_mlp_weights(*w, compute_dtype=jnp.float32)  # one-time prep
    out = jax.block_until_ready(mlp_pallas(x, params_f32))
    ref = mlp_reference(x, *w)
    assert out.shape == (batch, seq, hidden)
    assert jnp.allclose(out, ref, atol=2e-2, rtol=2e-2), "mismatch vs reference (f32 tiny)"

    # --- Test 2: multi-tile grid, M padding, I-axis accumulation; bf16 default. ---
    batch, seq, hidden, intermediate = 2, 160, 256, 512
    kx2, kw2 = jax.random.split(jax.random.PRNGKey(1))
    x2 = jax.random.normal(kx2, (batch, seq, hidden), dtype=jnp.float32)
    w2 = _make_params(kw2, hidden, intermediate)

    params_bf16 = prepare_mlp_weights(*w2, ti=256)                   # bf16 default
    out2 = jax.block_until_ready(mlp_pallas(x2, params_bf16, tm=128))
    ref2 = mlp_reference(x2, *w2, compute_dtype=jnp.bfloat16)
    assert out2.shape == (batch, seq, hidden)
    assert jnp.allclose(out2, ref2, atol=3e-2, rtol=3e-2), "mismatch vs reference (bf16 tiled)"

    # --- Test 3: generation-default tiles (tm/ti auto-selected), bf16 default. ---
    params_auto = prepare_mlp_weights(*w2)
    out3 = jax.block_until_ready(mlp_pallas(x2, params_auto))
    assert out3.shape == (batch, seq, hidden)
    assert jnp.allclose(out3, ref2, atol=3e-2, rtol=3e-2), "mismatch vs reference (bf16 auto)"

    print("KERNEL_OK")
</pallas_src>

<mosaic_0001>
module attributes {stable_mosaic.version = 11 : i64} {
  func.func @_mlp_kernel(%arg0: i32, %arg1: i32, %arg2: memref<8x128xf32, #tpu.memory_space<vmem>>, %arg3: memref<128x256xf32, #tpu.memory_space<vmem>>, %arg4: memref<1x256xf32, #tpu.memory_space<vmem>>, %arg5: memref<128x128xf32, #tpu.memory_space<vmem>>, %arg6: memref<1x128xf32, #tpu.memory_space<vmem>>, %arg7: memref<8x128xf32, #tpu.memory_space<vmem>>, %arg8: memref<8x128xf32, #tpu.memory_space<vmem>>) attributes {dimension_semantics = [#tpu.dimension_semantics<parallel>, #tpu.dimension_semantics<arbitrary>], iteration_bounds = array<i64: 2, 1>, scalar_prefetch = 0 : i64, scratch_operands = 1 : i64, tpu.core_type = #tpu.core_type<tc>, window_params = [{transform_indices = @transform_0, window_bounds = array<i64: 8, 128>}, {transform_indices = @transform_1, window_bounds = array<i64: 128, 256>}, {transform_indices = @transform_2, window_bounds = array<i64: 1, 256>}, {transform_indices = @transform_3, window_bounds = array<i64: 128, 128>}, {pipeline_mode = #tpu.pipeline_mode<synchronous>, transform_indices = @transform_4, window_bounds = array<i64: 1, 128>}, {transform_indices = @transform_5, window_bounds = array<i64: 8, 128>}]} {
    %c0_i32 = arith.constant 0 : i32
    %0 = arith.cmpi eq, %arg1, %c0_i32 : i32
    %1 = arith.extui %0 : i1 to i32
    %c0_i32_0 = arith.constant 0 : i32
    %2 = arith.cmpi ne, %1, %c0_i32_0 : i32
    scf.if %2 {
      %c0_14 = arith.constant 0 : index
      %c0_15 = arith.constant 0 : index
      %26 = vector.load %arg6[%c0_14, %c0_15] : memref<1x128xf32, #tpu.memory_space<vmem>>, vector<1x128xf32>
      %27 = vector.shape_cast %26 : vector<1x128xf32> to vector<1x128xf32>
      %28 = vector.broadcast %27 : vector<1x128xf32> to vector<8x128xf32>
      %c0_16 = arith.constant 0 : index
      %c0_17 = arith.constant 0 : index
      %29 = vector.load %arg8[%c0_16, %c0_17] : memref<8x128xf32, #tpu.memory_space<vmem>>, vector<8x128xf32>
      tpu.vector_store %arg8[%c0_16, %c0_17], %28 {strides = array<i32>} : memref<8x128xf32, #tpu.memory_space<vmem>>, vector<8x128xf32>,
    } else {
    }
    %c0 = arith.constant 0 : index
    %c0_1 = arith.constant 0 : index
    %3 = vector.load %arg2[%c0, %c0_1] : memref<8x128xf32, #tpu.memory_space<vmem>>, vector<8x128xf32>
    %c0_2 = arith.constant 0 : index
    %c0_3 = arith.constant 0 : index
    %4 = vector.load %arg3[%c0_2, %c0_3] : memref<128x256xf32, #tpu.memory_space<vmem>>, vector<128x256xf32>
    %cst = arith.constant dense<0.000000e+00> : vector<8x256xf32>
    %5 = tpu.matmul %3, %4, %cst {dimension_numbers = #tpu.dot_dimension_numbers<[1], [0], [0], [1], [0, 0, 1, 1], [], []>} : vector<8x128xf32>, vector<128x256xf32>, vector<8x256xf32> -> vector<8x256xf32>
    %c0_4 = arith.constant 0 : index
    %c0_5 = arith.constant 0 : index
    %6 = vector.load %arg4[%c0_4, %c0_5] : memref<1x256xf32, #tpu.memory_space<vmem>>, vector<1x256xf32>
    %7 = vector.broadcast %6 : vector<1x256xf32> to vector<8x256xf32>
    %8 = arith.addf %5, %7 : vector<8x256xf32>
    %9 = vector.extract_strided_slice %8 {offsets = [0, 0], sizes = [8, 128], strides = [1, 1]} : vector<8x256xf32> to vector<8x128xf32>
    %10 = vector.extract_strided_slice %8 {offsets = [0, 128], sizes = [8, 128], strides = [1, 1]} : vector<8x256xf32> to vector<8x128xf32>
    %11 = arith.negf %9 : vector<8x128xf32>
    %12 = math.exp %11 : vector<8x128xf32>
    %cst_6 = arith.constant 1.000000e+00 : f32
    %13 = vector.broadcast %cst_6 : f32 to vector<8x128xf32>
    %14 = arith.addf %13, %12 : vector<8x128xf32>
    %15 = arith.divf %13, %14 : vector<8x128xf32>
    %16 = arith.mulf %9, %15 : vector<8x128xf32>
    %17 = arith.mulf %16, %10 : vector<8x128xf32>
    %c0_7 = arith.constant 0 : index
    %c0_8 = arith.constant 0 : index
    %18 = vector.load %arg5[%c0_7, %c0_8] : memref<128x128xf32, #tpu.memory_space<vmem>>, vector<128x128xf32>
    %cst_9 = arith.constant dense<0.000000e+00> : vector<8x128xf32>
    %19 = tpu.matmul %17, %18, %cst_9 {dimension_numbers = #tpu.dot_dimension_numbers<[1], [0], [0], [1], [0, 0, 1, 1], [], []>} : vector<8x128xf32>, vector<128x128xf32>, vector<8x128xf32> -> vector<8x128xf32>
    %c0_i32_10 = arith.constant 0 : i32
    %20 = arith.cmpi slt, %arg1, %c0_i32_10 : i32
    %21 = arith.extui %20 : i1 to i32
    %c0_i32_11 = arith.constant 0 : i32
    %22 = arith.cmpi ne, %21, %c0_i32_11 : i32
    scf.if %22 {
      %c0_14 = arith.constant 0 : index
      %c0_15 = arith.constant 0 : index
      %26 = vector.load %arg8[%c0_14, %c0_15] : memref<8x128xf32, #tpu.memory_space<vmem>>, vector<8x128xf32>
      %27 = arith.addf %26, %19 : vector<8x128xf32>
      %c0_16 = arith.constant 0 : index
      %c0_17 = arith.constant 0 : index
      %28 = vector.load %arg8[%c0_16, %c0_17] : memref<8x128xf32, #tpu.memory_space<vmem>>, vector<8x128xf32>
      tpu.vector_store %arg8[%c0_16, %c0_17], %27 {strides = array<i32>} : memref<8x128xf32, #tpu.memory_space<vmem>>, vector<8x128xf32>,
    } else {
    }
    %c0_i32_12 = arith.constant 0 : i32
    %23 = arith.cmpi eq, %arg1, %c0_i32_12 : i32
    %24 = arith.extui %23 : i1 to i32
    %c0_i32_13 = arith.constant 0 : i32
    %25 = arith.cmpi ne, %24, %c0_i32_13 : i32
    scf.if %25 {
      %c0_14 = arith.constant 0 : index
      %c0_15 = arith.constant 0 : index
      %26 = vector.load %arg8[%c0_14, %c0_15] : memref<8x128xf32, #tpu.memory_space<vmem>>, vector<8x128xf32>
      %27 = arith.addf %26, %19 : vector<8x128xf32>
      %c0_16 = arith.constant 0 : index
      %c0_17 = arith.constant 0 : index
      %28 = vector.load %arg7[%c0_16, %c0_17] : memref<8x128xf32, #tpu.memory_space<vmem>>, vector<8x128xf32>
      tpu.vector_store %arg7[%c0_16, %c0_17], %27 {strides = array<i32>} : memref<8x128xf32, #tpu.memory_space<vmem>>, vector<8x128xf32>,
    } else {
    }
    return
  }
  func.func @transform_0(%arg0: i32, %arg1: i32) -> (i32, i32) {
    %c0_i32 = arith.constant 0 : i32
    %c0_i32_0 = arith.constant 0 : i32
    return %arg0, %c0_i32 : i32, i32
  }
  func.func @transform_1(%arg0: i32, %arg1: i32) -> (i32, i32) {
    %c0_i32 = arith.constant 0 : i32
    %c0_i32_0 = arith.constant 0 : i32
    return %c0_i32, %arg1 : i32, i32
  }
  func.func @transform_2(%arg0: i32, %arg1: i32) -> (i32, i32) {
    %c0_i32 = arith.constant 0 : i32
    %c0_i32_0 = arith.constant 0 : i32
    return %c0_i32, %arg1 : i32, i32
  }
  func.func @transform_3(%arg0: i32, %arg1: i32) -> (i32, i32) {
    %c0_i32 = arith.constant 0 : i32
    %c0_i32_0 = arith.constant 0 : i32
    return %arg1, %c0_i32 : i32, i32
  }
  func.func @transform_4(%arg0: i32, %arg1: i32) -> (i32, i32) {
    %c0_i32 = arith.constant 0 : i32
    %c0_i32_0 = arith.constant 0 : i32
    %c0_i32_1 = arith.constant 0 : i32
    return %c0_i32, %c0_i32_0 : i32, i32
  }
  func.func @transform_5(%arg0: i32, %arg1: i32) -> (i32, i32) {
    %c0_i32 = arith.constant 0 : i32
    %c0_i32_0 = arith.constant 0 : i32
    return %arg0, %c0_i32 : i32, i32
  }
}

</mosaic_0001>

<bundles_post_ra>
// kernel: tpu_custom_call.1
= control target key start
LH: loop header
LB: loop body
LE: loop exit
PB: predicated region body
PF: predicated region fallthrough
CT: control target
= control target key end

     0   :  { %10 = vsyncpa [#allocation4], 0  ;;  %s1382_s0 = inlined_call_operand.hbm [shape: f32[16,128], index: 0, kind: input, shape index: {}]   ;;  %s1383_s1 = inlined_call_operand.hbm [shape: f32[128,256], index: 1, kind: input, shape index: {}]   ;;  %s1384_s2 = inlined_call_operand.vmem [shape: f32[1,256], index: 2, kind: input, shape index: {}]   ;;  %s1385_s3 = inlined_call_operand.hbm [shape: f32[128,128], index: 3, kind: input, shape index: {}]   ;;  %s1386_s4 = inlined_call_operand.vmem [shape: f32[1,128], index: 4, kind: input, shape index: {}]   ;;  %s1387_s5 = inlined_call_operand.hbm [shape: f32[16,128], index: 5, kind: output, shape index: {}]  }
   0x1   :  { %12 = vsyncpa [#allocation4 + $0x1], 0 }
   0x2   :  { %13 = vsyncpa [#allocation7], 0 }
   0x3   :  { %14 = vsyncpa [#allocation5], 0 }
   0x4   :  { %16 = vsyncpa [#allocation5 + $0x1], 0  ;;  %s1117_s18 = smov 0   ;;  %s1119_s19 = smov 0  }
   0x5   :  { %s1121_s20 = smov 0   ;;  %s1123_s21 = smov 0  }
   0x6   :  { %s1125_s22 = smov 0   ;;  %s1127_s23 = smov 0  }
   0x7 LB: > { %s680_s24 = sadd.s32 4294967295, %s1074_s23   ;;  %s681_s25 = sadd.s32 4294967294, %s1074_s23   ;;  %s1074_s23 = sphi %s1127_s23, %s22_s23   ;;  %s1070_s22 = sphi %s1125_s22, %s1409_s22   ;;  %s1066_s21 = sphi %s1123_s21, %s1408_s21   ;;  %s1062_s20 = sphi %s1121_s20, %s1407_s20   ;;  %s1058_s19 = sphi %s1119_s19, %s1406_s19   ;;  %s1054_s18 = sphi %s1117_s18, %s1405_s18  }
   0x8   : > { %p54_p0 = scmp.ne.s32.totalorder %s1058_s19, %s1054_s18  ;;  %p1151_p1 = scmp.eq.s32.totalorder %s680_s24, 0 }
   0x9   : > { %p1155_p2 = scmp.eq.s32.totalorder %s680_s24, 1  ;;  %p183_p3 = scmp.eq.s32.totalorder %s681_s25, 1 }
   0xa   : > { %s1392_s26 = scalar_select %p1151_p1, 1, 0 }
   0xb   : > { %p1161_p4 = por %p1151_p1, %p54_p0  ;;  %p682_p5 = scmp.ge.s32.totalorder %s1074_s23, 1 }
   0xc   : > { %p1166_p6 = por %p183_p3, %p54_p0  ;;  %p190_p7 = scmp.lt.s32.totalorder %s1074_s23, 3 }
   0xd   : > { %s1394_s28 = scalar_select %p1161_p4, 1, 0 }
   0xe   : > { %s1395_s29 = scalar_select %p1166_p6, 1, 0 }
   0xf   : > { %p1171_p8 = pnand %p682_p5, %p190_p7  ;;  %s1076_s6 = smov [#allocation6]  }
  0x10   : > { %s205_s7 = sshll.u32 %s1076_s6, 4  ;;  %s1077_s9 = smov [#allocation8]   ;;  %s1175_s7 = int_to_ptr.vmem [resolvable:$true] %s205_s7 }
  0x11   : > { %p820_p9 = pneg %p1171_p8  ;;  %s229_s10 = sshll.u32 %s1077_s9, 4  ;;  %s1186_s10 = int_to_ptr.vmem [resolvable:$true] %s229_s10 }
  0x12   : > { %s902_s13 = scalar_lea.hbm %s1383_s1, 4096 }
  0x13   : > { %p1182_p11 = pnand %p820_p9, %p1151_p1  ;;  %p903_p12 = scmp.ne.s32.totalorder %s1383_s1, %s902_s13 }
  0x14   : > { %p909_p5 = scmp.lt.u32.totalorder %s902_s13, %s1383_s1 }
  0x15   : > { %p904_p13 = pneg %p1182_p11 }
  0x17   : > { %p905_p0 = pnand %p904_p13, %p903_p12 }
  0x19   : > { %p906_p3 = pneg %p905_p0 }
  0x1b   : > { %p911_p7 = pnand %p909_p5, %p906_p3 }
  0x1d   : > { %914 = shalt.err (!%p911_p7)
}
  0x1e   : > { %s915_s24 = scalar_lea.vmem %s1175_s7, 4096  ;;  %p923_p1 = scmp.lt.s32.totalorder %s1175_s7, %s1175_s7 }
  0x1f   : > { %p916_p9 = scmp.ne.s32.totalorder %s1175_s7, %s915_s24  ;;  %p924_p12 = scmp.lt.s32.totalorder %s915_s24, %s915_s24 }
  0x21   : > { %p918_p10 = pnand %p916_p9, %p904_p13  ;;  %p925_p0 = por %p924_p12, %p923_p1 }
  0x23   : > { %p919_p6 = pneg %p918_p10 }
  0x25   : > { %p926_p4 = pnand %p925_p0, %p919_p6 }
  0x27   : > { %929 = shalt.err (!%p926_p4)
}
  0x28   : > { %s1078_s25 = smov 256   ;;  %s1079_s6 = smov 16  }
  0x29   : > { %823 = dma.hbm_to_vmem [thread:$0]  (!%p1182_p11), %s1383_s1, 4096, %s1175_s7, [#allocation7], %s1078_s25, %s1078_s25, %s1079_s6  }
  0x2a   : > { %s930_s14 = scalar_lea.hbm %s1385_s3, 2048 }
  0x2b   : > { %p931_p1 = scmp.ne.s32.totalorder %s1385_s3, %s930_s14  ;;  %p937_p10 = scmp.lt.u32.totalorder %s930_s14, %s1385_s3 }
  0x2d   : > { %p933_p4 = pnand %p931_p1, %p904_p13 }
  0x2f   : > { %p934_p6 = pneg %p933_p4 }
  0x31   : > { %p939_p3 = pnand %p937_p10, %p934_p6 }
  0x33   : > { %942 = shalt.err (!%p939_p3)
}
  0x34   : > { %s943_s7 = scalar_lea.vmem %s1186_s10, 2048  ;;  %p951_p12 = scmp.lt.s32.totalorder %s1186_s10, %s1186_s10 }
  0x35   : > { %p944_p5 = scmp.ne.s32.totalorder %s1186_s10, %s943_s7  ;;  %p952_p0 = scmp.lt.s32.totalorder %s943_s7, %s943_s7 }
  0x37   : > { %p946_p7 = pnand %p944_p5, %p904_p13  ;;  %p953_p1 = por %p952_p0, %p951_p12 }
  0x39   : > { %p947_p9 = pneg %p946_p7 }
  0x3b   : > { %p954_p4 = pnand %p953_p1, %p947_p9 }
  0x3d   : > { %957 = shalt.err (!%p954_p4)
}
  0x3e   : > { %s1080_s25 = smov 128   ;;  %s1081_s6 = smov 8  }
  0x3f   : > { %826 = dma.hbm_to_vmem [thread:$0]  (!%p1182_p11), %s1385_s3, 2048, %s1186_s10, [#allocation7], %s1080_s25, %s1080_s25, %s1081_s6  }
  0x40   : > { %s34_s12 = sadd.s32 1, %s1070_s22  ;;  %s41_s13 = sadd.s32 1, %s1062_s20 }
  0x41   : > { %p36_p13 = scmp.ge.s32.totalorder %s34_s12, 2  ;;  %p48_p6 = scmp.ne.s32.totalorder %s1062_s20, %s1058_s19 }
  0x42   : > { %p49_p10 = scmp.eq.s32.totalorder %s1074_s23, 0  ;;  %p837_p3 = scmp.lt.s32.totalorder %s1074_s23, 2 }
  0x43   : > { %s1411_s12 = smov (%p36_p13, %s34_s12), 0  ;;  %p1250_p7 = por %p1155_p2, %p48_p6 }
  0x44   : > { %p50_p5 = por %p49_p10, %p48_p6  ;;  %s38_s8 = ssub.s32 %s1070_s22, %s1411_s12 }
  0x45   : > { %s1398_s14 = scalar_select %p1250_p7, 1, 0 }
  0x46   : > { %s246_s15 = sand.u32 1, %s1062_s20   ;;  %p39_p9 = scmp.eq.s32.totalorder %s38_s8, 0 }
  0x47   : > { %s687_s10 = sshll.u32 %s246_s15, 3  ;;  %s688_s16 = sshll.u32 %s1070_s22, 7 }
  0x48   : > { %s1259_s17 = scalar_select %p39_p9, %s1062_s20, %s41_s13  }
  0x49   : > { %s1264_s25 = scalar_lea.hbm %s1382_s0, %s688_s16  ;;  %s250_s27 = scalar_lea.vmem [#allocation3], %s687_s10 }
  0x4a   : > { %s257_s6 = sshll.u32 %s250_s27, 4  ;;  %p1268_p2 = pnand %p837_p3, %p50_p5  ;;  %s1272_s6 = int_to_ptr.vmem [resolvable:$true] %s257_s6 }
  0x4b   : > { %s247_s11 = scalar_lea.sflag [#allocation4], %s246_s15  ;;  %s958_s13 = scalar_lea.hbm %s1264_s25, 128 }
  0x4c   : > { %p959_p11 = scmp.ne.s32.totalorder %s1264_s25, %s958_s13  ;;  %p960_p12 = pneg %p1268_p2 }
  0x4d   : > { %s963_s16 = scalar_lea.hbm %s1382_s0, 256  ;;  %p964_p4 = scmp.lt.u32.totalorder %s1264_s25, %s1382_s0 }
  0x4e   : > { %p961_p0 = pnand %p960_p12, %p959_p11  ;;  %p965_p13 = scmp.lt.u32.totalorder %s963_s16, %s958_s13 }
  0x4f   : > { %p967_p10 = scmp.lt.u32.totalorder %s958_s13, %s1264_s25 }
  0x50   : > { %p962_p1 = pneg %p961_p0  ;;  %p966_p6 = por %p965_p13, %p964_p4 }
  0x52   : > { %p968_p3 = por %p967_p10, %p966_p6 }
  0x54   : > { %p969_p5 = pnand %p968_p3, %p962_p1 }
  0x56   : > { %972 = shalt.err (!%p969_p5)
}
  0x57   : > { %s973_s15 = scalar_lea.vmem %s1272_s6, 128  ;;  %s1082_s27 = smov [#allocation3]  }
  0x58   : > { %p974_p9 = scmp.ne.s32.totalorder %s1272_s6, %s973_s15  ;;  %s978_s8 = sshll.u32 %s1082_s27, 4  ;;  %s979_s8 = int_to_ptr.vmem [resolvable:$false] %s978_s8 }
  0x59   : > { %s980_s10 = scalar_lea.vmem %s979_s8, 256  ;;  %p981_p7 = scmp.lt.s32.totalorder %s1272_s6, %s979_s8 }
  0x5a   : > { %p976_p11 = pnand %p974_p9, %p960_p12  ;;  %p982_p4 = scmp.lt.s32.totalorder %s980_s10, %s973_s15 }
  0x5c   : > { %p977_p0 = pneg %p976_p11  ;;  %p983_p13 = por %p982_p4, %p981_p7 }
  0x5e   : > { %p984_p6 = pnand %p983_p13, %p977_p0 }
  0x60   : > { %987 = shalt.err (!%p984_p6)
}
  0x61   : > { %830 = dma.hbm_to_vmem [thread:$0]  (!%p1268_p2), %s1264_s25, 128, %s1272_s6, %s247_s11  }
  0x62   : > { %266 = sbr.rel (%p1171_p8) target bundleno = 616 (0x268), region = 40  ;;  %s1302_s13 = sand.u32 (!%p1171_p8), 1, %s1058_s19  }
  0x63   : > { %s690_s16 = sshll.u32 (!%p1171_p8), %s1302_s13, 3  ;;  %s269_s24 = scalar_lea.sflag (!%p1171_p8), [#allocation4], %s1302_s13 }
  0x64   : > { %s1308_s7 = scalar_lea.vmem (!%p1171_p8), [#allocation3], %s690_s16  ;;  %p1400_p7 = scmp.ne.s32.totalorder (!%p1171_p8), %s1394_s28, 0 }
  0x69   : > { %1041 = dma.done.wait (%p1400_p7), %s269_s24, 128  }
  0x6a   : > { %1043 = vsyncadd (%p1400_p7), %s269_s24, 4294967168  ;;  %p1401_p2 = scmp.ne.s32.totalorder %s1392_s26, 0 }
  0x6c   : > { %1045 = dma.done.wait (%p1401_p2), [#allocation7], 6144  }
  0x6d   : > { %1047 = vsyncadd (%p1401_p2), [#allocation7], 4294961152  ;;  %v1083_v0 = vmov 0.0   ;;  %v332_v1 = vld [vmem:[#allocation6 + $0x8] sm:$0xff]  ;;  %v334_v2 = vld [vmem:[#allocation6 + $0x18] sm:$0xff]  ;;  %v1084_v53 = vmov 0.0|0.0  }
  0x6e   : > { %439 = vmatprep.mubr.f32.mxu0 %v1083_v0  ;;  %v331_v3 = vld [vmem:[#allocation6] sm:$0xff]  ;;  %v752_v4 = vpack.c.bf16 %v334_v2, %v332_v1  ;;  %v333_v5 = vld [vmem:[#allocation6 + $0x10] sm:$0xff]  ;;  %v336_v6 = vld [vmem:[#allocation6 + $0x28] sm:$0xff]  ;;  %784 = vmatprep.subr.bf16.mxu1 %v1084_v53  ;;  %vm1085_vm0 = vmmov 0   ;;  %s697_s6 = sshll.u32 %s1066_s21, 7  ;;  %s310_s9 = scalar_lea.vmem [#allocation9], %s690_s16 }
  0x6f   : > { %v338_v7 = vld [vmem:[#allocation6 + $0x38] sm:$0xff]  ;;  %v754_v8 = vpack.c.bf16 %v333_v5, %v331_v3  ;;  %v335_v10 = vld [vmem:[#allocation6 + $0x20] sm:$0xff]  ;;  %v337_v11 = vld [vmem:[#allocation6 + $0x30] sm:$0xff]  ;;  %749 = vmatprep.mubr.msk.f32.mxu1 %vm1085_vm0, %v1083_v0  ;;  %s567_s11 = sshll.u32 %s310_s9, 4  ;;  %s1333_s8 = scalar_lea.hbm %s1387_s5, %s697_s6  ;;  %s1335_s11 = int_to_ptr.vmem [resolvable:$true] %s567_s11 }
  0x70   : > { %v756_v9 = vpack.c.bf16 %v338_v7, %v336_v6  ;;  %v340_v12 = vld [vmem:[#allocation6 + $0x48] sm:$0xff]  ;;  %753 = vmatprep.subr.bf16.mxu0 %v752_v4  ;;  %v342_v13 = vld [vmem:[#allocation6 + $0x58] sm:$0xff]  ;;  %v758_v14 = vpack.c.bf16 %v337_v11, %v335_v10  ;;  %v339_v16 = vld [vmem:[#allocation6 + $0x40] sm:$0xff]  ;;  %s554_s10 = scalar_lea.sflag [#allocation5], %s1302_s13  ;;  %s988_s24 = scalar_lea.vmem %s1335_s11, 128 }
  0x71   : > { %755 = vmatpush1.bf16.msra.mxu0 %v754_v8  ;;  %v760_v15 = vpack.c.bf16 %v342_v13, %v340_v12  ;;  %v341_v17 = vld [vmem:[#allocation6 + $0x50] sm:$0xff]  ;;  %v344_v18 = vld [vmem:[#allocation6 + $0x68] sm:$0xff]  ;;  %v346_v19 = vld [vmem:[#allocation6 + $0x78] sm:$0xff]  ;;  %v365_v12 = vlaneseq  ;;  %p989_p8 = scmp.ne.s32.totalorder %s1335_s11, %s988_s24  ;;  %p1402_p12 = scmp.ne.s32.totalorder %s1398_s14, 0 }
  0x72   : > { %757 = vmatprep.subr.bf16.mxu0 %v756_v9  ;;  %v762_v20 = vpack.c.bf16 %v341_v17, %v339_v16  ;;  %v764_v21 = vpack.c.bf16 %v346_v19, %v344_v18  ;;  %v343_v22 = vld [vmem:[#allocation6 + $0x60] sm:$0xff]  ;;  %v345_v23 = vld [vmem:[#allocation6 + $0x70] sm:$0xff]  ;;  %v348_v24 = vld [vmem:[#allocation6 + $0x88] sm:$0xff]  ;;  %s1086_s21 = smov [#allocation9]  }
  0x73   : > { %v350_v25 = vld [vmem:[#allocation6 + $0x98] sm:$0xff]  ;;  %v766_v26 = vpack.c.bf16 %v345_v23, %v343_v22  ;;  %v347_v28 = vld [vmem:[#allocation6 + $0x80] sm:$0xff]  ;;  %v349_v29 = vld [vmem:[#allocation6 + $0x90] sm:$0xff]  ;;  %v366_v13 = vshrl.u32 %v365_v12, 7  ;;  %p990_p1 = pnand %p989_p8, %p1402_p12  ;;  %s992_s16 = sshll.u32 %s1086_s21, 4  ;;  %s993_s16 = int_to_ptr.vmem [resolvable:$false] %s992_s16 }
  0x74   : > { %v768_v27 = vpack.c.bf16 %v350_v25, %v348_v24  ;;  %v352_v30 = vld [vmem:[#allocation6 + $0xa8] sm:$0xff]  ;;  %v354_v31 = vld [vmem:[#allocation6 + $0xb8] sm:$0xff]  ;;  %v770_v32 = vpack.c.bf16 %v349_v29, %v347_v28  ;;  %v351_v34 = vld [vmem:[#allocation6 + $0xa0] sm:$0xff]  ;;  %p995_p3 = scmp.lt.s32.totalorder %s1335_s11, %s993_s16 }
  0x75   : > { %759 = vmatpush1.bf16.msra.mxu0 %v758_v14  ;;  %v772_v33 = vpack.c.bf16 %v354_v31, %v352_v30  ;;  %v353_v35 = vld [vmem:[#allocation6 + $0xb0] sm:$0xff]  ;;  %v356_v36 = vld [vmem:[#allocation6 + $0xc8] sm:$0xff]  ;;  %v358_v37 = vld [vmem:[#allocation6 + $0xd8] sm:$0xff]  ;;  %v367_v14 = vsub.s32 0, %v366_v13  ;;  %v371_v23 = vsub.s32 1, %v366_v13  ;;  %p991_p10 = pneg %p990_p1 }
  0x76   : > { %761 = vmatprep.subr.bf16.mxu0 %v760_v15  ;;  %v774_v38 = vpack.c.bf16 %v353_v35, %v351_v34  ;;  %v776_v39 = vpack.c.bf16 %v358_v37, %v356_v36  ;;  %v355_v40 = vld [vmem:[#allocation6 + $0xc0] sm:$0xff]  ;;  %v357_v41 = vld [vmem:[#allocation6 + $0xd0] sm:$0xff]  ;;  %v360_v42 = vld [vmem:[#allocation6 + $0xe8] sm:$0xff] }
  0x77   : > { %v362_v43 = vld [vmem:[#allocation6 + $0xf8] sm:$0xff]  ;;  %v778_v44 = vpack.c.bf16 %v357_v41, %v355_v40  ;;  %v359_v46 = vld [vmem:[#allocation6 + $0xe0] sm:$0xff]  ;;  %v361_v47 = vld [vmem:[#allocation6 + $0xf0] sm:$0xff] }
  0x78   : > { %v780_v45 = vpack.c.bf16 %v362_v43, %v360_v42  ;;  %v782_v48 = vpack.c.bf16 %v361_v47, %v359_v46  ;;  %v330_v49 = vld [vmem:[%s1308_s7] sm:$0xff]  ;;  %v454_v50 = vld [vmem:[#allocation8] sm:$0xff]  ;;  %v455_v51 = vld [vmem:[#allocation8 + $0x8] sm:$0xff]  ;;  %s994_s7 = scalar_lea.vmem %s993_s16, 256 }
  0x79   : > { %763 = vmatpush1.bf16.msra.mxu0 %v762_v20  ;;  %v785_v52 = vpack.c.bf16 %v455_v51, %v454_v50  ;;  %v456_v54 = vld [vmem:[#allocation8 + $0x10] sm:$0xff]  ;;  %v457_v55 = vld [vmem:[#allocation8 + $0x18] sm:$0xff]  ;;  %v458_v57 = vld [vmem:[#allocation8 + $0x20] sm:$0xff]  ;;  %p996_p5 = scmp.lt.s32.totalorder %s994_s7, %s988_s24 }
  0x7a   : > { %765 = vmatprep.subr.bf16.mxu0 %v764_v21  ;;  %v788_v56 = vpack.c.bf16 %v457_v55, %v456_v54  ;;  %v459_v58 = vld [vmem:[#allocation8 + $0x28] sm:$0xff]  ;;  %v460_v60 = vld [vmem:[#allocation8 + $0x30] sm:$0xff]  ;;  %v461_v61 = vld [vmem:[#allocation8 + $0x38] sm:$0xff] }
  0x7b   : > { %786 = vmatpush3.bf16.msra.mxu1 %v785_v52  ;;  %v791_v59 = vpack.c.bf16 %v459_v58, %v458_v57  ;;  %v794_v62 = vpack.c.bf16 %v461_v61, %v460_v60  ;;  %v462_v63 = vld [vmem:[#allocation8 + $0x40] sm:$0xff]  ;;  %v463_v1 = vld [vmem:[#allocation8 + $0x48] sm:$0xff]  ;;  %v464_v3 = vld [vmem:[#allocation8 + $0x50] sm:$0xff]  ;;  %p997_p9 = por %p996_p5, %p995_p3 }
  0x7c   : > { %787 = vmatprep.subr.bf16.mxu1 %v1084_v53  ;;  %v797_v2 = vpack.c.bf16 %v463_v1, %v462_v63  ;;  %v465_v4 = vld [vmem:[#allocation8 + $0x58] sm:$0xff]  ;;  %v466_v6 = vld [vmem:[#allocation8 + $0x60] sm:$0xff]  ;;  %v467_v7 = vld [vmem:[#allocation8 + $0x68] sm:$0xff] }
  0x7d   : > { %767 = vmatpush1.bf16.msra.mxu0 %v766_v26  ;;  %v800_v5 = vpack.c.bf16 %v465_v4, %v464_v3  ;;  %v803_v8 = vpack.c.bf16 %v467_v7, %v466_v6  ;;  %v468_v9 = vld [vmem:[#allocation8 + $0x70] sm:$0xff]  ;;  %v469_v10 = vld [vmem:[#allocation8 + $0x78] sm:$0xff]  ;;  %p998_p11 = pnand %p997_p9, %p991_p10 }
  0x7e   : > { %769 = vmatprep.subr.bf16.mxu0 %v768_v27  ;;  %v806_v11 = vpack.c.bf16 %v469_v10, %v468_v9  ;;  %v363_v15 = vld [vmem:[%s1384_s2] sm:$0x3] }
  0x7f   : > { %789 = vmatpush3.bf16.msra.mxu1 %v788_v56  ;;  %v368_v16 = vrot.slane %v363_v15, %v367_v14  ;;  %v372_v0 = vrot.slane %v363_v15, %v371_v23  ;;  %v694_v28 = vld [vmem:[%s1386_s4] ss:$0 sm:$0xff] }
  0x80   : > { %790 = vmatprep.subr.bf16.mxu1 %v1084_v53 }
  0x81   : > { %771 = vmatpush1.bf16.msra.mxu0 %v770_v32 }
  0x82   : > { %773 = vmatprep.subr.bf16.mxu0 %v772_v33 }
  0x83   : > { %792 = vmatpush3.bf16.msra.mxu1 %v791_v59 }
  0x84   : > { %793 = vmatprep.subr.bf16.mxu1 %v1084_v53 }
  0x85   : > { %775 = vmatpush1.bf16.msra.mxu0 %v774_v38 }
  0x86   : > { %777 = vmatprep.subr.bf16.mxu0 %v776_v39 }
  0x87   : > { %795 = vmatpush3.bf16.msra.mxu1 %v794_v62 }
  0x88   : > { %796 = vmatprep.subr.bf16.mxu1 %v1084_v53 }
  0x89   : > { %779 = vmatpush1.bf16.msra.mxu0 %v778_v44 }
  0x8a   : > { %781 = vmatprep.subr.bf16.mxu0 %v780_v45 }
  0x8b   : > { %798 = vmatpush3.bf16.msra.mxu1 %v797_v2 }
  0x8c   : > { %799 = vmatprep.subr.bf16.mxu1 %v1084_v53 }
  0x8d   : > { %783 = vmatpush1.bf16.msra.mxu0 %v782_v48 }
  0x8f   : > { %801 = vmatpush3.bf16.msra.mxu1 %v800_v5 }
  0x90   : > { %440 = vmatmul.mubr.f32.vlgmr.msra.gmra.mrb[0].mxu0 %v330_v49  ;;  %802 = vmatprep.subr.bf16.mxu1 %v1084_v53 }
  0x93   : > { %804 = vmatpush3.bf16.msra.mxu1 %v803_v8 }
  0x94   : > { %805 = vmatprep.subr.bf16.mxu1 %v1084_v53 }
  0x97   : > { %807 = vmatpush3.bf16.msra.mxu1 %v806_v11 }
 0x163   : > { %v441_v17 = vpop.f32.mrb[0].mxu0 }
 0x164   : > { %v442_v18 = vadd.f32 %v441_v17, %v368_v16  ;;  %v443_v19 = vpop.f32.mrb[1].mxu0 }
 0x165   : > { %v444_v26 = vadd.f32 %v443_v19, %v372_v0 }
 0x166   : > { %v695_v20 = vmul.f32 -1.442695, %v442_v18 }
 0x168   : > { %898 = vpow2.f32 %v695_v20 }
 0x172   : > { %v899_v21 = vpop.eup %898 }
 0x173   : > { %v449_v22 = vadd.f32 1.0, %v899_v21 }
 0x175   : > { %900 = vrcp.f32 %v449_v22 }
 0x17f   : > { %v901_v24 = vpop.eup %900 }
 0x180   : > { %v452_v25 = vmul.f32 %v901_v24, %v442_v18 }
 0x182   : > { %v453_v27 = vmul.f32 %v452_v25, %v444_v26 }
 0x184   : > { %750 = vmatmul.mubr.f32.vlgmr.msra.gmra.mrb[0].mxu1 %v453_v27 }
 0x257   : > { %v536_v29 = vpop.f32.mrb[0].mxu1 }
 0x258   : > { %v551_v30 = vadd.f32 %v694_v28, %v536_v29  ;;  %v751_v31 = vpop.f32.mrb[1].mxu1 }
 0x25a   : > { %552 = vst [vmem:[%s310_s9] sm:$0xff] %v551_v30 }
 0x25b   : > { %1001 = shalt.err (!%p998_p11)
}
 0x25c   : > { %s1002_s13 = scalar_lea.hbm %s1333_s8, 128  ;;  %s1006_s30 = scalar_lea.hbm %s1387_s5, 256 }
 0x25d   : > { %p1003_p0 = scmp.ne.s32.totalorder %s1333_s8, %s1002_s13  ;;  %p1007_p6 = scmp.lt.u32.totalorder %s1333_s8, %s1387_s5 }
 0x25e   : > { %p1008_p7 = scmp.lt.u32.totalorder %s1006_s30, %s1002_s13  ;;  %p1010_p8 = scmp.lt.u32.totalorder %s1002_s13, %s1333_s8 }
 0x25f   : > { %p1004_p4 = pnand %p1003_p0, %p1402_p12 }
 0x260   : > { %p1009_p2 = por %p1008_p7, %p1007_p6 }
 0x261   : > { %p1005_p13 = pneg %p1004_p4 }
 0x262   : > { %p1011_p1 = por %p1010_p8, %p1009_p2 }
 0x264   : > { %p1012_p10 = pnand %p1011_p1, %p1005_p13 }
 0x266   : > { %1015 = shalt.err (!%p1012_p10)
}
 0x267   : > { %818 = dma.vmem_to_hbm [thread:$0]  (%p1402_p12), %s1335_s11, 128, %s1333_s8, %s554_s10  }
 0x268 PF: > { %s579_s9 = sand.u32 1, %s1054_s18   ;;  %p1403_p3 = scmp.ne.s32.totalorder %s1395_s29, 0 }
 0x269   : > { %p1404_p5 = scmp.ge.s32.totalorder %s1074_s23, 2  ;;  %s580_s15 = scalar_lea.sflag [#allocation5], %s579_s9 }
 0x26b   : > { %p832_p9 = pnand %p1404_p5, %p1403_p3 }
 0x26d   : > { %1049 = dma.done.wait (!%p832_p9), %s580_s15, 128  }
 0x26e   : > { %1051 = vsyncadd (!%p832_p9), %s580_s15, 4294967168  ;;  %s22_s23 = sadd.s32 1, %s1074_s23   ;;  %s1405_s18 = smov %s1058_s19 }
 0x26f   : > { %p19_p11 = scmp.ge.s32.totalorder %s22_s23, 4   ;;  %s1406_s19 = smov %s1062_s20 }
 0x270   : > { %s1407_s20 = smov %s1259_s17  ;;  %s1408_s21 = smov %s1070_s22 }
 0x271   : > { %s1409_s22 = smov %s1411_s12  ;;  %21 = sbr.rel (!%p19_p11) target bundleno = 7 (0x7), region = 110 }
 0x278   :  { %585 = vsyncpa [#allocation4], 1 }
 0x279   :  { %587 = vsyncpa [#allocation4 + $0x1], 1 }
 0x27a   :  { %588 = vsyncpa [#allocation7], 1 }
 0x27b   :  { %589 = vsyncpa [#allocation5], 1 }
 0x27c   :  { %591 = vsyncpa [#allocation5 + $0x1], 1 }

</bundles_post_ra>
